<compile_context>
chip_gen: v7x
topology: tpu7x:2x2x1
jax: 0.10.0
libtpu: 0.0.40
codegen_flags: <defaults>
</compile_context>

<pallas_src>
import jax
import jax.numpy as jnp
from jax.experimental import pallas as pl
from jax.experimental.pallas import tpu as pltpu


# ----------------------------- kernels --------------------------------------

def _gin_layer1_kernel(a_ref, x_ref, w1_ref, b1_ref, w2_ref, b2_ref, eps_ref,
                       h_ref):
    """h[rows] = relu(MLP1((1+eps1)*x[rows] + A[rows, :] @ x))."""
    tm = h_ref.shape[0]
    r0 = pl.multiple_of(pl.program_id(0) * tm, tm)

    a = a_ref[...].astype(jnp.float32)                                # (TM, Np)
    agg = jnp.dot(a, x_ref[...], preferred_element_type=jnp.float32)  # (TM, F)
    x_rows = x_ref[pl.ds(r0, tm), :]                                  # (TM, F)

    h = (1.0 + eps_ref[0]) * x_rows + agg
    h = jnp.maximum(
        jnp.dot(h, w1_ref[...], preferred_element_type=jnp.float32) + b1_ref[...],
        0.0)                                                          # MLP1 inner ReLU
    h = jnp.maximum(
        jnp.dot(h, w2_ref[...], preferred_element_type=jnp.float32) + b2_ref[...],
        0.0)                                                          # outer F.relu
    # TODO(synk): F.dropout(training=True) is stochastic; eval-mode identity here.
    h_ref[...] = h


def _gin_layer2_kernel(a_ref, h_ref, w3_ref, b3_ref, w4_ref, b4_ref, eps_ref,
                       out_ref):
    """out[rows] = log_softmax(MLP2((1+eps2)*h[rows] + A[rows, :] @ h))."""
    tm = out_ref.shape[0]
    r0 = pl.multiple_of(pl.program_id(0) * tm, tm)

    a = a_ref[...].astype(jnp.float32)                                # (TM, Np)
    agg = jnp.dot(a, h_ref[...], preferred_element_type=jnp.float32)  # (TM, H)
    h_rows = h_ref[pl.ds(r0, tm), :]                                  # (TM, H)

    z = (1.0 + eps_ref[0]) * h_rows + agg
    z = jnp.maximum(
        jnp.dot(z, w3_ref[...], preferred_element_type=jnp.float32) + b3_ref[...],
        0.0)                                                          # MLP2 inner ReLU
    z = jnp.dot(z, w4_ref[...], preferred_element_type=jnp.float32) + b4_ref[...]

    # log_softmax over classes (dim=1)
    m = jnp.max(z, axis=1, keepdims=True)
    zc = z - m
    lse = jnp.log(jnp.sum(jnp.exp(zc), axis=1, keepdims=True))
    out_ref[...] = zc - lse


# ----------------------------- wrapper --------------------------------------

def _round_up(a, m):
    return ((a + m - 1) // m) * m


def _choose_row_tile(n, budget_bytes=44 * (1 << 20)):
    """Row-block size TM (bf16 sublane aligned) + padded node count Np."""
    if n <= 512:
        tm = _round_up(n, 16)               # single block == full (padded) array
        return tm, tm
    for tm in (1024, 512, 256, 128, 64, 32, 16):
        np_ = _round_up(n, tm)
        # double-buffered bf16 A row block gets ~half the VMEM budget
        if 2 * tm * np_ * 2 <= budget_bytes // 2:
            return tm, np_
    return 16, _round_up(n, 16)


def _vmem_limit_bytes(tm, np_, f, h, c):
    a_buf = 2 * tm * np_ * 2                        # double-buffered bf16 A block
    resident = 2 * np_ * max(f, h) * 4              # full x (layer 1) / h (layer 2)
    out_buf = 2 * tm * max(h, c) * 4                # double-buffered output block
    weights = 4 * (f * h + h * h + h * c + c * c + 2 * (h + c))
    est = a_buf + resident + out_buf + weights + (1 << 20)   # 1 MiB slack
    return int(min(max(est, 16 * (1 << 20)), 48 * (1 << 20)))


def gin_forward(x, A, params):
    N, F = x.shape
    H = params["w1"].shape[1]
    C = params["w4"].shape[1]

    TM, Np = _choose_row_tile(N)
    grid = (Np // TM,)

    # Pad to the tile boundary; zero rows/cols of A and zero rows of x do not
    # perturb valid rows.  Stream A as bf16 (exact for small edge counts).
    A_p = jnp.zeros((Np, Np), jnp.bfloat16).at[:N, :N].set(A.astype(jnp.bfloat16))
    x_p = jnp.zeros((Np, F), jnp.float32).at[:N, :].set(x.astype(jnp.float32))

    cparams = pltpu.CompilerParams(
        dimension_semantics=("parallel",),                 # shard rows across TCs (v7x)
        vmem_limit_bytes=_vmem_limit_bytes(TM, Np, F, H, C),
    )

    def full(shape):                                       # resident: same block each step
        return pl.BlockSpec(shape, lambda i: (0, 0))

    a_spec = pl.BlockSpec((TM, Np), lambda i: (i, 0))      # streamed row block of A
    smem = pl.BlockSpec(memory_space=pltpu.SMEM)           # eps scalar

    # ---- layer 1: h = relu(MLP1((1+eps1)*x + A@x)) ----
    h = pl.pallas_call(
        _gin_layer1_kernel,
        out_shape=jax.ShapeDtypeStruct((Np, H), jnp.float32),
        grid=grid,
        in_specs=[a_spec,
                  full((Np, F)),
                  full(params["w1"].shape), full(params["b1"].shape),
                  full(params["w2"].shape), full(params["b2"].shape),
                  smem],
        out_specs=pl.BlockSpec((TM, H), lambda i: (i, 0)),
        compiler_params=cparams,
    )(A_p, x_p,
      params["w1"], params["b1"], params["w2"], params["b2"],
      params["eps"][0:1])

    # ---- layer 2: out = log_softmax(MLP2((1+eps2)*h + A@h)) ----
    out = pl.pallas_call(
        _gin_layer2_kernel,
        out_shape=jax.ShapeDtypeStruct((Np, C), jnp.float32),
        grid=grid,
        in_specs=[a_spec,
                  full((Np, H)),
                  full(params["w3"].shape), full(params["b3"].shape),
                  full(params["w4"].shape), full(params["b4"].shape),
                  smem],
        out_specs=pl.BlockSpec((TM, C), lambda i: (i, 0)),
        compiler_params=cparams,
    )(A_p, h,
      params["w3"], params["b3"], params["w4"], params["b4"],
      params["eps"][1:2])

    return out[:N]


# ----------------------------- params / reference ---------------------------

def init_params(key, num_features, num_classes, hidden=16):
    ks = jax.random.split(key, 8)

    def lin(kw, kb, fan_in, fan_out):
        bound = 1.0 / jnp.sqrt(jnp.float32(fan_in))
        w = jax.random.uniform(kw, (fan_in, fan_out), jnp.float32, -bound, bound)
        b = jax.random.uniform(kb, (1, fan_out), jnp.float32, -bound, bound)
        return w, b

    w1, b1 = lin(ks[0], ks[1], num_features, hidden)
    w2, b2 = lin(ks[2], ks[3], hidden, hidden)
    w3, b3 = lin(ks[4], ks[5], hidden, num_classes)
    w4, b4 = lin(ks[6], ks[7], num_classes, num_classes)
    eps = jnp.zeros((2,), jnp.float32)   # GINConv eps init 0 (train_eps=True)
    return dict(w1=w1, b1=b1, w2=w2, b2=b2, w3=w3, b3=b3, w4=w4, b4=b4, eps=eps)


def jax_reference(x, A, p):
    h = (1.0 + p["eps"][0]) * x + A @ x
    h = jnp.maximum(h @ p["w1"] + p["b1"], 0.0)
    h = jnp.maximum(h @ p["w2"] + p["b2"], 0.0)
    h2 = (1.0 + p["eps"][1]) * h + A @ h
    h2 = jnp.maximum(h2 @ p["w3"] + p["b3"], 0.0)
    h2 = h2 @ p["w4"] + p["b4"]
    return jax.nn.log_softmax(h2, axis=1)


if __name__ == "__main__":
    N, F, C = 16, 8, 4   # num nodes, num_features, num_classes

    key = jax.random.PRNGKey(0)
    k_x, k_p = jax.random.split(key)
    x = jax.random.normal(k_x, (N, F), jnp.float32)

    # Ring graph, edges in both directions: edge_index shape (2, 2N).
    src = jnp.concatenate([jnp.arange(N), (jnp.arange(N) + 1) % N])
    dst = jnp.concatenate([(jnp.arange(N) + 1) % N, jnp.arange(N)])
    edge_index = jnp.stack([src, dst])  # (2, 32)

    # Dense adjacency: A[dst, src] = multiplicity -> agg = A @ x (sum over in-edges).
    A = jnp.zeros((N, N), jnp.float32).at[edge_index[1], edge_index[0]].add(1.0)

    params = init_params(k_p, F, C)

    out = gin_forward(x, A, params)
    jax.block_until_ready(out)

    ref = jax_reference(x, A, params)
    assert out.shape == (N, C)
    assert jnp.allclose(out, ref, atol=1e-5, rtol=1e-5)
    print("KERNEL_OK")
</pallas_src>

<mosaic_0001>
module attributes {stable_mosaic.version = 11 : i64} {
  func.func @_gin_layer1_kernel(%arg0: i32, %arg1: memref<16x16xbf16, #tpu.memory_space<vmem>>, %arg2: memref<16x8xf32, #tpu.memory_space<vmem>>, %arg3: memref<8x16xf32, #tpu.memory_space<vmem>>, %arg4: memref<1x16xf32, #tpu.memory_space<vmem>>, %arg5: memref<16x16xf32, #tpu.memory_space<vmem>>, %arg6: memref<1x16xf32, #tpu.memory_space<vmem>>, %arg7: memref<1xf32, #tpu.memory_space<smem>>, %arg8: memref<16x16xf32, #tpu.memory_space<vmem>>) attributes {dimension_semantics = [#tpu.dimension_semantics<parallel>], iteration_bounds = array<i64: 1>, scalar_prefetch = 0 : i64, scratch_operands = 0 : i64, tpu.core_type = #tpu.core_type<tc>, window_params = [{transform_indices = @transform_0, window_bounds = array<i64: 16, 16>}, {pipeline_mode = #tpu.pipeline_mode<synchronous>, transform_indices = @transform_1, window_bounds = array<i64: 16, 8>}, {pipeline_mode = #tpu.pipeline_mode<synchronous>, transform_indices = @transform_2, window_bounds = array<i64: 8, 16>}, {pipeline_mode = #tpu.pipeline_mode<synchronous>, transform_indices = @transform_3, window_bounds = array<i64: 1, 16>}, {pipeline_mode = #tpu.pipeline_mode<synchronous>, transform_indices = @transform_4, window_bounds = array<i64: 16, 16>}, {pipeline_mode = #tpu.pipeline_mode<synchronous>, transform_indices = @transform_5, window_bounds = array<i64: 1, 16>}, {transform_indices = @transform_6, window_bounds = array<i64: 1>}, {transform_indices = @transform_7, window_bounds = array<i64: 16, 16>}]} {
    %c16_i32 = arith.constant 16 : i32
    %0 = arith.muli %arg0, %c16_i32 : i32
    %1 = tpu.assume_multiple %0, 16 : i32
    %c0 = arith.constant 0 : index
    %c0_0 = arith.constant 0 : index
    %2 = vector.load %arg1[%c0, %c0_0] : memref<16x16xbf16, #tpu.memory_space<vmem>>, vector<16x16xbf16>
    %3 = arith.extf %2 : vector<16x16xbf16> to vector<16x16xf32>
    %c0_1 = arith.constant 0 : index
    %c0_2 = arith.constant 0 : index
    %4 = vector.load %arg2[%c0_1, %c0_2] : memref<16x8xf32, #tpu.memory_space<vmem>>, vector<16x8xf32>
    %cst = arith.constant dense<0.000000e+00> : vector<16x8xf32>
    %5 = tpu.matmul %3, %4, %cst {dimension_numbers = #tpu.dot_dimension_numbers<[1], [0], [0], [1], [0, 0, 1, 1], [], []>} : vector<16x16xf32>, vector<16x8xf32>, vector<16x8xf32> -> vector<16x8xf32>
    %6 = arith.index_cast %1 : i32 to index
    %c0_3 = arith.constant 0 : index
    %7 = vector.load %arg2[%6, %c0_3] : memref<16x8xf32, #tpu.memory_space<vmem>>, vector<16x8xf32>
    %c0_4 = arith.constant 0 : index
    %8 = memref.load %arg7[%c0_4] : memref<1xf32, #tpu.memory_space<smem>>
    %cst_5 = arith.constant 1.000000e+00 : f32
    %9 = arith.addf %cst_5, %8 : f32
    %10 = vector.broadcast %9 : f32 to vector<16x8xf32>
    %11 = arith.mulf %10, %7 : vector<16x8xf32>
    %12 = arith.addf %11, %5 : vector<16x8xf32>
    %c0_6 = arith.constant 0 : index
    %c0_7 = arith.constant 0 : index
    %13 = vector.load %arg3[%c0_6, %c0_7] : memref<8x16xf32, #tpu.memory_space<vmem>>, vector<8x16xf32>
    %cst_8 = arith.constant dense<0.000000e+00> : vector<16x16xf32>
    %14 = tpu.matmul %12, %13, %cst_8 {dimension_numbers = #tpu.dot_dimension_numbers<[1], [0], [0], [1], [0, 0, 1, 1], [], []>} : vector<16x8xf32>, vector<8x16xf32>, vector<16x16xf32> -> vector<16x16xf32>
    %c0_9 = arith.constant 0 : index
    %c0_10 = arith.constant 0 : index
    %15 = vector.load %arg4[%c0_9, %c0_10] : memref<1x16xf32, #tpu.memory_space<vmem>>, vector<1x16xf32>
    %16 = vector.broadcast %15 : vector<1x16xf32> to vector<16x16xf32>
    %17 = arith.addf %14, %16 : vector<16x16xf32>
    %cst_11 = arith.constant 0.000000e+00 : f32
    %18 = vector.broadcast %cst_11 : f32 to vector<16x16xf32>
    %19 = arith.maximumf %17, %18 : vector<16x16xf32>
    %c0_12 = arith.constant 0 : index
    %c0_13 = arith.constant 0 : index
    %20 = vector.load %arg5[%c0_12, %c0_13] : memref<16x16xf32, #tpu.memory_space<vmem>>, vector<16x16xf32>
    %cst_14 = arith.constant dense<0.000000e+00> : vector<16x16xf32>
    %21 = tpu.matmul %19, %20, %cst_14 {dimension_numbers = #tpu.dot_dimension_numbers<[1], [0], [0], [1], [0, 0, 1, 1], [], []>} : vector<16x16xf32>, vector<16x16xf32>, vector<16x16xf32> -> vector<16x16xf32>
    %c0_15 = arith.constant 0 : index
    %c0_16 = arith.constant 0 : index
    %22 = vector.load %arg6[%c0_15, %c0_16] : memref<1x16xf32, #tpu.memory_space<vmem>>, vector<1x16xf32>
    %23 = vector.broadcast %22 : vector<1x16xf32> to vector<16x16xf32>
    %24 = arith.addf %21, %23 : vector<16x16xf32>
    %cst_17 = arith.constant 0.000000e+00 : f32
    %25 = vector.broadcast %cst_17 : f32 to vector<16x16xf32>
    %26 = arith.maximumf %24, %25 : vector<16x16xf32>
    %c0_18 = arith.constant 0 : index
    %c0_19 = arith.constant 0 : index
    %27 = vector.load %arg8[%c0_18, %c0_19] : memref<16x16xf32, #tpu.memory_space<vmem>>, vector<16x16xf32>
    tpu.vector_store %arg8[%c0_18, %c0_19], %26 {strides = array<i32>} : memref<16x16xf32, #tpu.memory_space<vmem>>, vector<16x16xf32>,
    return
  }
  func.func @transform_0(%arg0: i32) -> (i32, i32) {
    %c0_i32 = arith.constant 0 : i32
    %c0_i32_0 = arith.constant 0 : i32
    return %arg0, %c0_i32 : i32, i32
  }
  func.func @transform_1(%arg0: i32) -> (i32, i32) {
    %c0_i32 = arith.constant 0 : i32
    %c0_i32_0 = arith.constant 0 : i32
    %c0_i32_1 = arith.constant 0 : i32
    return %c0_i32, %c0_i32_0 : i32, i32
  }
  func.func @transform_2(%arg0: i32) -> (i32, i32) {
    %c0_i32 = arith.constant 0 : i32
    %c0_i32_0 = arith.constant 0 : i32
    %c0_i32_1 = arith.constant 0 : i32
    return %c0_i32, %c0_i32_0 : i32, i32
  }
  func.func @transform_3(%arg0: i32) -> (i32, i32) {
    %c0_i32 = arith.constant 0 : i32
    %c0_i32_0 = arith.constant 0 : i32
    %c0_i32_1 = arith.constant 0 : i32
    return %c0_i32, %c0_i32_0 : i32, i32
  }
  func.func @transform_4(%arg0: i32) -> (i32, i32) {
    %c0_i32 = arith.constant 0 : i32
    %c0_i32_0 = arith.constant 0 : i32
    %c0_i32_1 = arith.constant 0 : i32
    return %c0_i32, %c0_i32_0 : i32, i32
  }
  func.func @transform_5(%arg0: i32) -> (i32, i32) {
    %c0_i32 = arith.constant 0 : i32
    %c0_i32_0 = arith.constant 0 : i32
    %c0_i32_1 = arith.constant 0 : i32
    return %c0_i32, %c0_i32_0 : i32, i32
  }
  func.func @transform_6(%arg0: i32) -> i32 {
    %c0_i32 = arith.constant 0 : i32
    %c0_i32_0 = arith.constant 0 : i32
    return %c0_i32 : i32
  }
  func.func @transform_7(%arg0: i32) -> (i32, i32) {
    %c0_i32 = arith.constant 0 : i32
    %c0_i32_0 = arith.constant 0 : i32
    return %arg0, %c0_i32 : i32, i32
  }
}

</mosaic_0001>

<bundles_post_ra>
// kernel: tpu_custom_call.1
= control target key start
LH: loop header
LB: loop body
LE: loop exit
PB: predicated region body
PF: predicated region fallthrough
CT: control target
= control target key end

     0   :  { %vm35_vm0 = vcmask 130048   ;;  %s494_s0 = inlined_call_operand.vmem [shape: bf16[16,16], index: 0, kind: input, shape index: {}]   ;;  %s495_s1 = inlined_call_operand.vmem [shape: f32[16,8], index: 1, kind: input, shape index: {}]   ;;  %s496_s2 = inlined_call_operand.vmem [shape: f32[8,16], index: 2, kind: input, shape index: {}]   ;;  %s497_s3 = inlined_call_operand.vmem [shape: f32[1,16], index: 3, kind: input, shape index: {}]   ;;  %s498_s4 = inlined_call_operand.vmem [shape: f32[16,16], index: 4, kind: input, shape index: {}]   ;;  %s499_s5 = inlined_call_operand.vmem [shape: f32[1,16], index: 5, kind: input, shape index: {}]   ;;  %s500_s6 = inlined_call_operand.<no memory space> [shape: f32[1], index: 6, kind: input, shape index: {}]   ;;  %s501_s7 = inlined_call_operand.hbm [shape: f32[16,16], index: 7, kind: output, shape index: {}]  }
   0x1   :  { %v33_v0 = vld [vmem:[%s495_s1] sm:$0xff]  ;;  %v34_v1 = vld [vmem:[%s495_s1 + $0x8] sm:$0xff] }
   0x2   :  { %v338_v2 = vld [vmem:[%s494_s0] sm:$0xff]   ;;  %v371_v3 = vpack.c.bf16 %v34_v1, %v33_v0 }
   0x3   :  { %v339_v4 = vunpack.c.l.bf16 %v338_v2 }
   0x4   :  { %13 = vsyncpa [#allocation4], 0  ;;  %372 = vmatprep.subr.bf16.mxu0 %v371_v3  ;;  %v340_v5 = vunpack.c.h.bf16 %v338_v2  ;;  %v127_v6 = vld [vmem:[%s496_s2] sm:$0xff]  ;;  %s121_s0 = sadd.f32 1.0, %s500_s6  ;;  %vm135_vm1 = vcmask 64512   ;;  %v220_v15 = vld [vmem:[%s498_s4 + $0x8] sm:$0xff] }
   0x5   :  { %356 = vmatprep.mubr.msk.f32.mxu0 %vm35_vm0, %v339_v4  ;;  %374 = vmatpush3.bf16.msra.mxu0 %v371_v3  ;;  %v219_v14 = vld [vmem:[%s498_s4] sm:$0xff]  ;;  %s406_s4 = smov [#allocation3]  }
   0x6   :  { %359 = vmatprep.subr.mxu1 %v127_v6  ;;  %v122_v7 = vstv %s121_s0  ;;  %v375_v16 = vpack.c.bf16 %v220_v15, %v219_v14  ;;  %v331_v17 = vld [vmem:[%s497_s3] ss:$0 sm:$0xff]  ;;  %s318_s16 = sshll.u32 %s406_s4, 4  ;;  %s319_s16 = int_to_ptr.vmem [resolvable:$true] %s318_s16 }
   0x7   :  { %360 = vmatpush3.msra.mxu1 %v127_v6  ;;  %v123_v8 = vmul.f32 %v122_v7, %v33_v0  ;;  %v124_v9 = vmul.f32 %v122_v7, %v34_v1  ;;  %v334_v24 = vld [vmem:[%s499_s5] ss:$0 sm:$0xff]  ;;  %s382_s3 = scalar_lea.vmem %s319_s16, 256  ;;  %p387_p1 = scmp.lt.s32.totalorder %s319_s16, %s319_s16 }
   0x8   :  { %357 = vmatmul.mubr.msk.f32.vlgmr.msra.gmra.mrb[0].mxu0 %vm35_vm0, %v340_v5  ;;  %376 = vmatprep.subr.bf16.mxu1 %v375_v16  ;;  %p383_p0 = scmp.ne.s32.totalorder %s319_s16, %s382_s3  ;;  %p388_p2 = scmp.lt.s32.totalorder %s382_s3, %s382_s3 }
   0xa   :  { %p389_p3 = por %p388_p2, %p387_p1 }
   0xc   :  { %p390_p4 = pnand %p389_p3, %p383_p0 }
  0xdb   :  { %v358_v10 = vpop.f32.mrb[0].mxu0 }
  0xdc   :  { %v108_v11 = vpop.f32.mrb[1].mxu0  ;;  %v126_v13 = vadd.f32 %v358_v10, %v124_v9 }
  0xdd   :  { %v125_v12 = vadd.f32 %v123_v8, %v108_v11 }
  0xdf   :  { %361 = vmatprep.mubr.msk.f32.mxu1 %vm135_vm1, %v125_v12 }
  0xe0   :  { %362 = vmatmul.mubr.msk.f32.vlgmr.msra.gmra.mrb[0].mxu1 %vm135_vm1, %v126_v13 }
  0xe1   :  { %378 = vmatpush3.bf16.msra.mxu1 %v375_v16 }
 0x1b3   :  { %v363_v18 = vpop.f32.mrb[0].mxu1 }
 0x1b4   :  { %v214_v19 = vadd.f32 %v363_v18, %v331_v17  ;;  %v208_v20 = vpop.f32.mrb[1].mxu1 }
 0x1b5   :  { %v209_v21 = vadd.f32 %v331_v17, %v208_v20 }
 0x1b6   :  { %v218_v23 = vmax.f32 %v214_v19, 0.0 }
 0x1b7   :  { %v217_v22 = vmax.f32 %v209_v21, 0.0 }
 0x1b9   :  { %368 = vmatprep.mubr.msk.f32.mxu1 %vm35_vm0, %v217_v22 }
 0x1ba   :  { %369 = vmatmul.mubr.msk.f32.vlgmr.msra.gmra.mrb[2].mxu1 %vm35_vm0, %v218_v23 }
 0x28d   :  { %v370_v25 = vpop.f32.mrb[2].mxu1 }
 0x28e   :  { %v306_v26 = vadd.f32 %v370_v25, %v334_v24  ;;  %v300_v27 = vpop.f32.mrb[3].mxu1 }
 0x28f   :  { %v301_v28 = vadd.f32 %v334_v24, %v300_v27 }
 0x290   :  { %v310_v29 = vmax.f32 %v306_v26, 0.0 }
 0x291   :  { %v309_v30 = vmax.f32 %v301_v28, 0.0 }
 0x292   :  { %312 = vst.msk [vmem:[#allocation3 + $0x8] sm:$0xff] %vm35_vm0, %v310_v29 }
 0x293   :  { %311 = vst.msk [vmem:[#allocation3] sm:$0xff] %vm35_vm0, %v309_v30 }
 0x294   :  { %393 = shalt.err (!%p390_p4)
}
 0x295   :  { %s394_s18 = scalar_lea.hbm %s501_s7, 256 }
 0x296   :  { %p395_p5 = scmp.ne.s32.totalorder %s501_s7, %s394_s18  ;;  %p398_p6 = scmp.lt.u32.totalorder %s394_s18, %s501_s7 }
 0x298   :  { %p400_p7 = pnand %p398_p6, %p395_p5 }
 0x29a   :  { %403 = shalt.err (!%p400_p7)
}
 0x29b   :  { %s407_s23 = smov 128   ;;  %s408_s24 = smov 8  }
 0x29c   :  { %324 = dma.vmem_to_hbm [thread:$0]  %s319_s16, 256, %s501_s7, [#allocation4], %s407_s23, %s407_s23, %s408_s24  }
 0x29d   :  { %404 = dma.done.wait [#allocation4], 256  }
 0x29e   :  { %405 = vsyncadd [#allocation4], 4294967040 }
 0x29f   :  { %328 = vsyncpa [#allocation4], 1 }

</bundles_post_ra>
